<compile_context>
chip_gen: v5e
topology: v5e:2x2
jax: 0.10.0
libtpu: 0.0.40
codegen_flags: <defaults>
</compile_context>

<pallas_src>
import functools

import jax
import jax.numpy as jnp
from jax import lax
from jax.experimental import pallas as pl
from jax.experimental.pallas import tpu as pltpu


def _round_up(x: int, m: int) -> int:
    return ((x + m - 1) // m) * m


def _action_embedding_kernel(qr_ref, table_ref, out_ref, acc_ref, *, fold, embed_dim):
    """One grid step consumes one (tile_af, fold*D) folded table tile.

    Grid = (split, blocks_per_split): axis 0 is "parallel" (v7x megacore),
    axis 1 is the "arbitrary" reduction over folded table tiles.

    qr_ref    : VMEM (S_pad, 2)         int32    -- (folded row, phase) per action, -1 padded
    table_ref : VMEM (tile_af, fold*D)  f32/bf16 -- folded table tile
    out_ref   : VMEM (1, 1, D)          f32      -- per-split partial sum of embeddings
    acc_ref   : VMEM (fold, fold*D)     f32      -- phase-wise running weighted sum
    """
    j = pl.program_id(1)
    num_j = pl.num_programs(1)
    tile_af = table_ref.shape[0]

    @pl.when(j == 0)
    def _init():
        acc_ref[...] = jnp.zeros_like(acc_ref)

    # Folded-row base of this tile.
    base = (pl.program_id(0) * num_j + j) * tile_af

    # Vectorized histogram (no per-element loop):
    #   counts[p, a] = #{ i : action_indices[i] == (base + a) * fold + p }
    # Padded (-1, -1) slots and indices belonging to other tiles match neither
    # factor, so they contribute exactly zero.
    q_rel = qr_ref[:, 0:1] - base                                    # (S_pad, 1)
    phase = qr_ref[:, 1:2]                                           # (S_pad, 1)
    row_iota = lax.broadcasted_iota(jnp.int32, (1, tile_af), 1)
    phase_iota = lax.broadcasted_iota(jnp.int32, (1, fold), 1)
    row_match = (q_rel == row_iota).astype(jnp.float32)              # (S_pad, tile_af)
    phase_match = (phase == phase_iota).astype(jnp.float32)          # (S_pad, fold)
    counts = lax.dot_general(                                        # (fold, tile_af)
        phase_match, row_match,
        dimension_numbers=(((0,), (0,)), ((), ())),
        preferred_element_type=jnp.float32)

    # Feed the table to the MXU in its storage dtype; cast the small-integer
    # counts instead (exact in bf16 while S <= 256).
    acc_ref[...] += jnp.dot(counts.astype(table_ref.dtype), table_ref[...],
                            preferred_element_type=jnp.float32)

    @pl.when(j == num_j - 1)
    def _finalize():
        acc = acc_ref[...]
        # Phase combine: original row (a*fold + p) lives at acc[p, p*D:(p+1)*D].
        total = acc[0:1, 0:embed_dim]
        for p in range(1, fold):
            total = total + acc[p:p + 1, p * embed_dim:(p + 1) * embed_dim]
        out_ref[...] = total.reshape(out_ref.shape)


# Cap on the lane-PADDED size of one table-tile buffer.  BlockSpec
# double-buffers it (~24 MiB total): safe inside v7x's 64 MiB physical VMEM
# and large enough that the ~0.35 us per-grid-step overhead is negligible on
# v5e/v6e (128 MiB VMEM, lower HBM BW).
_PER_BUFFER_TILE_BYTES = 12 << 20


def action_embedding(action_indices: jax.Array, table: jax.Array) -> jax.Array:
    """action_indices: (S,) int, table: (A, D) float -> (D,) float mean embedding."""
    num_actions, embed_dim = table.shape
    seq_len = action_indices.shape[0]
    assert seq_len > 0, "ActionEmbedding requires at least one action index"
    # TODO(synk): PyTorch nn.Embedding raises on out-of-range indices; here they
    # silently contribute a zero row to the mean (the divisor stays S).

    # Fold table rows into lanes when embed_dim < 128 (fold=8 at D=16).
    fold = max(1, 128 // embed_dim) if embed_dim < 128 else 1
    folded_width = fold * embed_dim
    itemsize = jnp.dtype(table.dtype).itemsize

    # --- Tile sizing with lane-padded VMEM accounting. ---
    padded_row_bytes = _round_up(folded_width, 128) * itemsize
    max_rows = max(8, (_PER_BUFFER_TILE_BYTES // padded_row_bytes) // 8 * 8)
    folded_rows_needed = pl.cdiv(num_actions, fold)
    tile_af = min(max_rows, _round_up(folded_rows_needed, 8))
    num_blocks = pl.cdiv(folded_rows_needed, tile_af)

    # Split the reduction across the two v7x TensorCores when there is more
    # than one tile; 1-TC chips just run the "parallel" axis sequentially.
    split = 2 if num_blocks >= 2 else 1
    blocks_per_split = pl.cdiv(num_blocks, split)
    folded_rows_total = split * blocks_per_split * tile_af
    padded_actions = folded_rows_total * fold

    # Zero-pad to the tiled extent (padded rows get zero counts and are zero-
    # valued), then fold rows into lanes: (A_pad, D) -> (A_pad/fold, fold*D).
    table_folded = jnp.pad(
        table, ((0, padded_actions - num_actions), (0, 0))
    ).reshape(folded_rows_total, folded_width)

    # Index plumbing: split each index into (folded row, phase) once here so
    # the kernel needs no integer division; pad with -1 so padded slots match
    # nothing in the kernel's one-hot compares.
    idx = action_indices.astype(jnp.int32)
    seq_pad = _round_up(seq_len, 8)
    qr = jnp.stack([idx // fold, idx % fold], axis=1)
    qr = jnp.pad(qr, ((0, seq_pad - seq_len), (0, 0)), constant_values=-1)

    # Scoped-VMEM limit derived from actual lane-padded, double-buffered use.
    table_vmem = 2 * tile_af * padded_row_bytes
    idx_vmem = 2 * seq_pad * 128 * 4
    vmem_limit = min(max(table_vmem + idx_vmem + (8 << 20), 32 << 20), 48 << 20)

    kernel = functools.partial(
        _action_embedding_kernel, fold=fold, embed_dim=embed_dim)

    partials = pl.pallas_call(
        kernel,
        out_shape=jax.ShapeDtypeStruct((split, 1, embed_dim), jnp.float32),
        grid_spec=pltpu.PrefetchScalarGridSpec(
            num_scalar_prefetch=0,
            grid=(split, blocks_per_split),
            in_specs=[
                pl.BlockSpec((seq_pad, 2), lambda i, j: (0, 0)),
                pl.BlockSpec((tile_af, folded_width),
                             lambda i, j: (i * blocks_per_split + j, 0)),
            ],
            out_specs=pl.BlockSpec((1, 1, embed_dim), lambda i, j: (i, 0, 0)),
            scratch_shapes=[pltpu.VMEM((fold, folded_width), jnp.float32)],
        ),
        compiler_params=pltpu.CompilerParams(
            dimension_semantics=("parallel", "arbitrary"),
            vmem_limit_bytes=vmem_limit,
        ),
    )(qr, table_folded)

    # Sum the per-core partials, take the mean in f32, cast back.
    return (partials.sum(axis=(0, 1)) * (1.0 / seq_len)).astype(table.dtype)


if __name__ == "__main__":
    num_actions = 32
    embedding_dim = 16
    seq = 8

    key = jax.random.PRNGKey(0)
    k_table, k_idx = jax.random.split(key)

    # nn.Embedding default init: N(0, 1)
    table = jax.random.normal(k_table, (num_actions, embedding_dim), dtype=jnp.float32)
    action_indices = jax.random.randint(k_idx, (seq,), 0, num_actions, dtype=jnp.int32)

    out = action_embedding(action_indices, table)
    out = jax.block_until_ready(out)

    # Reference check (plain JAX).
    ref = jnp.take(table, action_indices, axis=0).mean(axis=0)
    assert out.shape == (embedding_dim,)
    assert jnp.allclose(out, ref, atol=1e-5, rtol=1e-5), (out, ref)

    print("KERNEL_OK")
</pallas_src>

<mosaic_0001>
module attributes {stable_mosaic.version = 11 : i64} {
  func.func @_action_embedding_kernel(%arg0: i32, %arg1: i32, %arg2: memref<8x2xi32, #tpu.memory_space<vmem>>, %arg3: memref<8x128xf32, #tpu.memory_space<vmem>>, %arg4: memref<1x1x16xf32, #tpu.memory_space<vmem>>, %arg5: memref<8x128xf32, #tpu.memory_space<vmem>>) attributes {dimension_semantics = [#tpu.dimension_semantics<parallel>, #tpu.dimension_semantics<arbitrary>], iteration_bounds = array<i64: 1, 1>, scalar_prefetch = 0 : i64, scratch_operands = 1 : i64, tpu.core_type = #tpu.core_type<tc>, window_params = [{pipeline_mode = #tpu.pipeline_mode<synchronous>, transform_indices = @transform_0, window_bounds = array<i64: 8, 2>}, {transform_indices = @transform_1, window_bounds = array<i64: 8, 128>}, {transform_indices = @transform_2, window_bounds = array<i64: 1, 1, 16>}]} {
    %c0_i32 = arith.constant 0 : i32
    %0 = arith.cmpi eq, %arg1, %c0_i32 : i32
    %1 = arith.extui %0 : i1 to i32
    %c0_i32_0 = arith.constant 0 : i32
    %2 = arith.cmpi ne, %1, %c0_i32_0 : i32
    scf.if %2 {
      %cst_12 = arith.constant 0.000000e+00 : f32
      %31 = vector.broadcast %cst_12 : f32 to vector<8x128xf32>
      %c0_13 = arith.constant 0 : index
      %c0_14 = arith.constant 0 : index
      %32 = vector.load %arg5[%c0_13, %c0_14] : memref<8x128xf32, #tpu.memory_space<vmem>>, vector<8x128xf32>
      tpu.vector_store %arg5[%c0_13, %c0_14], %31 {strides = array<i32>} : memref<8x128xf32, #tpu.memory_space<vmem>>, vector<8x128xf32>,
    } else {
    }
    %c1_i32 = arith.constant 1 : i32
    %3 = arith.muli %arg0, %c1_i32 : i32
    %4 = arith.addi %3, %arg1 : i32
    %c8_i32 = arith.constant 8 : i32
    %5 = arith.muli %4, %c8_i32 : i32
    %c0 = arith.constant 0 : index
    %c0_1 = arith.constant 0 : index
    %6 = vector.load %arg2[%c0, %c0_1] : memref<8x2xi32, #tpu.memory_space<vmem>>, vector<8x1xi32>
    %7 = vector.broadcast %5 : i32 to vector<8x1xi32>
    %8 = arith.subi %6, %7 : vector<8x1xi32>
    %c0_2 = arith.constant 0 : index
    %c1 = arith.constant 1 : index
    %9 = vector.load %arg2[%c0_2, %c1] : memref<8x2xi32, #tpu.memory_space<vmem>>, vector<8x1xi32>
    %10 = tpu.iota {dimensions = array<i32: 1>} : vector<1x8xi32>
    %11 = tpu.iota {dimensions = array<i32: 1>} : vector<1x8xi32>
    %12 = vector.broadcast %8 : vector<8x1xi32> to vector<8x8xi32>
    %13 = vector.broadcast %10 : vector<1x8xi32> to vector<8x8xi32>
    %14 = arith.cmpi eq, %12, %13 : vector<8x8xi32>
    %15 = arith.extui %14 : vector<8x8xi1> to vector<8x8xi32>
    %16 = arith.sitofp %15 : vector<8x8xi32> to vector<8x8xf32>
    %17 = vector.broadcast %9 : vector<8x1xi32> to vector<8x8xi32>
    %18 = vector.broadcast %11 : vector<1x8xi32> to vector<8x8xi32>
    %19 = arith.cmpi eq, %17, %18 : vector<8x8xi32>
    %20 = arith.extui %19 : vector<8x8xi1> to vector<8x8xi32>
    %21 = arith.sitofp %20 : vector<8x8xi32> to vector<8x8xf32>
    %cst = arith.constant dense<0.000000e+00> : vector<8x8xf32>
    %22 = tpu.matmul %21, %16, %cst {dimension_numbers = #tpu.dot_dimension_numbers<[0], [0], [1], [1], [0, 1, 1, 1], [], []>} : vector<8x8xf32>, vector<8x8xf32>, vector<8x8xf32> -> vector<8x8xf32>
    %c0_3 = arith.constant 0 : index
    %c0_4 = arith.constant 0 : index
    %23 = vector.load %arg5[%c0_3, %c0_4] : memref<8x128xf32, #tpu.memory_space<vmem>>, vector<8x128xf32>
    %c0_5 = arith.constant 0 : index
    %c0_6 = arith.constant 0 : index
    %24 = vector.load %arg3[%c0_5, %c0_6] : memref<8x128xf32, #tpu.memory_space<vmem>>, vector<8x128xf32>
    %cst_7 = arith.constant dense<0.000000e+00> : vector<8x128xf32>
    %25 = tpu.matmul %22, %24, %cst_7 {dimension_numbers = #tpu.dot_dimension_numbers<[1], [0], [0], [1], [0, 0, 1, 1], [], []>} : vector<8x8xf32>, vector<8x128xf32>, vector<8x128xf32> -> vector<8x128xf32>
    %26 = arith.addf %23, %25 : vector<8x128xf32>
    %c0_8 = arith.constant 0 : index
    %c0_9 = arith.constant 0 : index
    %27 = vector.load %arg5[%c0_8, %c0_9] : memref<8x128xf32, #tpu.memory_space<vmem>>, vector<8x128xf32>
    tpu.vector_store %arg5[%c0_8, %c0_9], %26 {strides = array<i32>} : memref<8x128xf32, #tpu.memory_space<vmem>>, vector<8x128xf32>,
    %c0_i32_10 = arith.constant 0 : i32
    %28 = arith.cmpi eq, %arg1, %c0_i32_10 : i32
    %29 = arith.extui %28 : i1 to i32
    %c0_i32_11 = arith.constant 0 : i32
    %30 = arith.cmpi ne, %29, %c0_i32_11 : i32
    scf.if %30 {
      %c0_12 = arith.constant 0 : index
      %c0_13 = arith.constant 0 : index
      %31 = vector.load %arg5[%c0_12, %c0_13] : memref<8x128xf32, #tpu.memory_space<vmem>>, vector<8x128xf32>
      %32 = vector.extract_strided_slice %31 {offsets = [0, 0], sizes = [1, 16], strides = [1, 1]} : vector<8x128xf32> to vector<1x16xf32>
      %33 = vector.extract_strided_slice %31 {offsets = [1, 16], sizes = [1, 16], strides = [1, 1]} : vector<8x128xf32> to vector<1x16xf32>
      %34 = arith.addf %32, %33 : vector<1x16xf32>
      %35 = vector.extract_strided_slice %31 {offsets = [2, 32], sizes = [1, 16], strides = [1, 1]} : vector<8x128xf32> to vector<1x16xf32>
      %36 = arith.addf %34, %35 : vector<1x16xf32>
      %37 = vector.extract_strided_slice %31 {offsets = [3, 48], sizes = [1, 16], strides = [1, 1]} : vector<8x128xf32> to vector<1x16xf32>
      %38 = arith.addf %36, %37 : vector<1x16xf32>
      %39 = vector.extract_strided_slice %31 {offsets = [4, 64], sizes = [1, 16], strides = [1, 1]} : vector<8x128xf32> to vector<1x16xf32>
      %40 = arith.addf %38, %39 : vector<1x16xf32>
      %41 = vector.extract_strided_slice %31 {offsets = [5, 80], sizes = [1, 16], strides = [1, 1]} : vector<8x128xf32> to vector<1x16xf32>
      %42 = arith.addf %40, %41 : vector<1x16xf32>
      %43 = vector.extract_strided_slice %31 {offsets = [6, 96], sizes = [1, 16], strides = [1, 1]} : vector<8x128xf32> to vector<1x16xf32>
      %44 = arith.addf %42, %43 : vector<1x16xf32>
      %45 = vector.extract_strided_slice %31 {offsets = [7, 112], sizes = [1, 16], strides = [1, 1]} : vector<8x128xf32> to vector<1x16xf32>
      %46 = arith.addf %44, %45 : vector<1x16xf32>
      %47 = vector.shape_cast %46 : vector<1x16xf32> to vector<1x1x16xf32>
      %c0_14 = arith.constant 0 : index
      %c0_15 = arith.constant 0 : index
      %c0_16 = arith.constant 0 : index
      %48 = vector.load %arg4[%c0_14, %c0_15, %c0_16] : memref<1x1x16xf32, #tpu.memory_space<vmem>>, vector<1x1x16xf32>
      tpu.vector_store %arg4[%c0_14, %c0_15, %c0_16], %47 {strides = array<i32>} : memref<1x1x16xf32, #tpu.memory_space<vmem>>, vector<1x1x16xf32>,
    } else {
    }
    return
  }
  func.func @transform_0(%arg0: i32, %arg1: i32) -> (i32, i32) {
    %c0_i32 = arith.constant 0 : i32
    %c0_i32_0 = arith.constant 0 : i32
    %c0_i32_1 = arith.constant 0 : i32
    return %c0_i32, %c0_i32_0 : i32, i32
  }
  func.func @transform_1(%arg0: i32, %arg1: i32) -> (i32, i32) {
    %c1_i32 = arith.constant 1 : i32
    %0 = arith.muli %arg0, %c1_i32 : i32
    %1 = arith.addi %0, %arg1 : i32
    %c0_i32 = arith.constant 0 : i32
    %c0_i32_0 = arith.constant 0 : i32
    return %1, %c0_i32 : i32, i32
  }
  func.func @transform_2(%arg0: i32, %arg1: i32) -> (i32, i32, i32) {
    %c0_i32 = arith.constant 0 : i32
    %c0_i32_0 = arith.constant 0 : i32
    %c0_i32_1 = arith.constant 0 : i32
    return %arg0, %c0_i32, %c0_i32_0 : i32, i32, i32
  }
}

</mosaic_0001>

<bundles_post_ra>
// kernel: tpu_custom_call.1
= control target key start
LH: loop header
LB: loop body
LE: loop exit
PB: predicated region body
PF: predicated region fallthrough
CT: control target
= control target key end

     0   :  { %s282_s0 = inlined_call_operand.vmem [shape: s32[8,2], index: 0, kind: input, shape index: {}]   ;;  %s283_s1 = inlined_call_operand.vmem [shape: f32[8,128], index: 1, kind: input, shape index: {}]   ;;  %s284_s2 = inlined_call_operand.hbm [shape: f32[1,1,16], index: 2, kind: output, shape index: {}]  }
   0x1   :  { %v36_v0 = vld [vmem:[%s282_s0] sm:$0xff] }
   0x2   :  { %7 = vsyncpa [#allocation4], 0  ;;  %v246_v1 = vmov 1   ;;  %v247_v2 = vmov 0   ;;  %v39_v3 = vlaneseq  ;;  %v248_v6 = vmov 0.0   ;;  %v110_v11 = vld [vmem:[%s283_s1] sm:$0xff] }
   0x3   :  { %217 = vset.pattern.permute.xlu0 %v246_v1  ;;  %v249_v9 = vmov 1.0   ;;  %vm85_vm2 = vcmask 64512   ;;  %129 = vmatpush.msra.mxu1 %v110_v11  ;;  %s250_s12 = smov 48   ;;  %s251_s13 = smov 96   ;;  %vm176_vm3 = vcmask 122880  }
   0x4   :  { %48 = vperm.xlu0 %217, %v36_v0   ;;  %v40_v4 = vand.u32 127, %v39_v3  ;;  %s252_s14 = smov 112   ;;  %s253_s15 = smov 16  }
   0x5   :  { %s254_s16 = smov 80   ;;  %s255_s1 = smov 64  }
   0x6   :  { %s256_s17 = smov 32   ;;  %s257_s18 = smov [#allocation3]  }
   0x7   :  { %s183_s19 = sshll.u32 %s257_s18, 4  ;;  %s185_s22 = sshll.u32 %s284_s2, 4  ;;  %s184_s19 = int_to_ptr.vmem [resolvable:$true] %s183_s19  ;;  %s186_s22 = int_to_ptr.hbm [resolvable:$true] %s185_s22 }
   0xc   :  { %218 = vset.pattern.permute.xlu0 %v247_v2 }
   0xd   :  { %42 = vperm.xlu0 %218, %v36_v0  }
  0x15   :  { %219 = vset.pattern.permute.xlu0 %v246_v1 }
  0x76   :  { %v49_v5 = vpop.permute.xlu0 %48 }
  0x77   :  { %vm50_vm0 = vcmp.eq.s32.totalorder %v49_v5, %v40_v4 }
  0x78   :  { %v201_v7 = vsel %vm50_vm0, 1.0, %v248_v6 }
  0x79   :  { %53 = vxpose.xlu1.b32.start.end [1/1] (short) (narrow) %v201_v7, 8 }
  0x7f   :  { %v43_v8 = vpop.permute.xlu0 %42 }
  0x80   :  { %vm44_vm1 = vcmp.eq.s32.totalorder %v43_v8, %v40_v4 }
  0x81   :  { %202 = vmatpush.msk.msra.mxu0 %vm44_vm1, %v249_v9 }
 0x11d   :  { %v69_v10 = vpop.trf.xlu1 }
 0x11e   :  { %203 = vmatmul.msk.f32.vlgmr.msra.gmra.mxu0 %vm85_vm2, %v69_v10 }
 0x19b   :  { %v106_v12 = vpop.f32.mrf.mxu0 }
 0x19c   :  { %204 = vmatmul.msk.f32.vlgmr.msra.gmra.mxu1 %vm85_vm2, %v106_v12 }
 0x219   :  { %v131_v13 = vpop.f32.mrf.mxu1 }
 0x21a   :  { %v161_v14 = vrot.slane %v131_v13, 5  ;;  %v146_v15 = vrot.slane %v131_v13, 2  ;;  %v141_v16 = vrot.slane %v131_v13, 1  ;;  %v171_v17 = vrot.slane %v131_v13, 7 }
 0x21b   :  { %v151_v18 = vrot.slane %v131_v13, 3  ;;  %v156_v19 = vrot.slane %v131_v13, 4  ;;  %v166_v20 = vrot.slane %v131_v13, 6 }
 0x21c   :  { %162 = vrot.lane.b32.xlu0 %v161_v14, %s250_s12  ;;  %147 = vrot.lane.b32.xlu2 %v146_v15, %s251_s13 }
 0x21d   :  { %142 = vrot.lane.b32.xlu1 %v141_v16, %s252_s14 }
 0x224   :  { %172 = vrot.lane.b32.xlu0 %v171_v17, %s253_s15  ;;  %152 = vrot.lane.b32.xlu2 %v151_v18, %s254_s16 }
 0x22c   :  { %157 = vrot.lane.b32.xlu2 %v156_v19, %s255_s1 }
 0x234   :  { %167 = vrot.lane.b32.xlu2 %v166_v20, %s256_s17 }
 0x276   :  { %v148_v21 = vpop.permute.xlu2 %147 }
 0x27e   :  { %v153_v22 = vpop.permute.xlu2 %152 }
 0x286   :  { %v158_v23 = vpop.permute.xlu2 %157 }
 0x28e   :  { %v163_v26 = vpop.permute.xlu0 %162  ;;  %v168_v31 = vpop.permute.xlu2 %167 }
 0x28f   :  { %v143_v24 = vpop.permute.xlu1 %142 }
 0x290   :  { %v145_v25 = vadd.f32 %v143_v24, %v131_v13 }
 0x292   :  { %v150_v27 = vadd.f32 %v148_v21, %v145_v25 }
 0x294   :  { %v155_v28 = vadd.f32 %v153_v22, %v150_v27 }
 0x296   :  { %v160_v29 = vadd.f32 %v158_v23, %v155_v28  ;;  %v173_v33 = vpop.permute.xlu0 %172 }
 0x298   :  { %v165_v30 = vadd.f32 %v163_v26, %v160_v29 }
 0x29a   :  { %v170_v32 = vadd.f32 %v168_v31, %v165_v30 }
 0x29c   :  { %v175_v34 = vadd.f32 %v173_v33, %v170_v32 }
 0x29e   :  { %177 = vst.msk [vmem:[#allocation3] sm:$0x1] %vm176_vm3, %v175_v34 }
 0x29f   :  { %188 = dma.vmem_to_hbm [thread:$0]  %s184_s19, 16, %s186_s22, [#allocation4]  }
 0x2a0   :  { %244 = dma.done.wait [#allocation4], 16  }
 0x2a1   :  { %245 = vsyncadd [#allocation4], 4294967280 }
 0x2a2   :  { %193 = vsyncpa [#allocation4], 1 }

</bundles_post_ra>
